<compile_context>
chip_gen: v7x
topology: tpu7x:2x2x1
jax: 0.10.0
libtpu: 0.0.40
codegen_flags: <defaults>
</compile_context>

<pallas_src>
import functools

import jax
import jax.numpy as jnp
from jax.experimental import pallas as pl
from jax.experimental.pallas import tpu as pltpu


def _round_up(x, m):
    return ((x + m - 1) // m) * m


def _make_critic_kernel(n_parts):
    """Builds a fused 3-layer MLP critic kernel over `n_parts` input slices."""

    def kernel(*refs):
        # refs = x_0..x_{n-1}, w1_0..w1_{n-1}, b1, w2, b2, w3_row, b3, o_ref
        x_refs = refs[:n_parts]
        w1_refs = refs[n_parts:2 * n_parts]
        b1_ref, w2_ref, b2_ref, w3_ref, b3_ref, o_ref = refs[2 * n_parts:]

        # Layer 1: sum of partial matmuls (replaces concat([state]+actions)).
        acc = jnp.dot(x_refs[0][...], w1_refs[0][...],
                      preferred_element_type=jnp.float32)
        for xr, wr in zip(x_refs[1:], w1_refs[1:]):
            acc = acc + jnp.dot(xr[...], wr[...],
                                preferred_element_type=jnp.float32)
        h1 = jnp.maximum(acc + b1_ref[...], 0.0)

        # Layer 2: MXU matmul + bias + ReLU.
        h2 = jnp.dot(h1, w2_ref[...], preferred_element_type=jnp.float32)
        h2 = jnp.maximum(h2 + b2_ref[...], 0.0)

        # Layer 3 (out_features == 1): VPU multiply + lane reduce instead of a
        # >99%-padding MXU pass. b3 is a scalar read from SMEM.
        q = jnp.sum(h2 * w3_ref[...], axis=-1, keepdims=True) + b3_ref[0]
        o_ref[...] = q.astype(o_ref.dtype)

    return kernel


@functools.partial(jax.jit, static_argnames=("tile_b",))
def multiagent_critic_forward(state, actions, params, *, tile_b=256):
    """state: [B, S], actions: list of [B, A_i], params: dict W1,b1,W2,b2,W3,b3."""
    parts = [state] + list(actions)
    B = state.shape[0]
    H = params["W1"].shape[0]
    dims = [int(p.shape[1]) for p in parts]
    n_parts = len(parts)

    # Batch tile: 8-aligned (f32 sublanes), capped so double-buffered tiles
    # comfortably fit the v7x 64 MiB / v5e default scoped VMEM budgets.
    TILE_B = min(int(tile_b), _round_up(max(B, 1), 8))
    num_tiles = pl.cdiv(B, TILE_B)
    B_pad = num_tiles * TILE_B
    if B_pad != B:
        # Padded rows are benign and sliced off below.
        parts = [jnp.pad(p, ((0, B_pad - B), (0, 0))) for p in parts]

    # Pre-split W1 (transposed to [in, out]) per input slice; weights stay
    # resident in VMEM across grid iterations (constant index_maps).
    w1_t = params["W1"].T.astype(jnp.float32)            # [D, H]
    offs = [0]
    for d in dims:
        offs.append(offs[-1] + d)
    w1_parts = [w1_t[offs[i]:offs[i + 1], :] for i in range(n_parts)]

    b1 = params["b1"].reshape(1, H).astype(jnp.float32)   # [1, H]
    w2 = params["W2"].T.astype(jnp.float32)               # [H, H]
    b2 = params["b2"].reshape(1, H).astype(jnp.float32)   # [1, H]
    w3 = params["W3"].reshape(1, H).astype(jnp.float32)   # [1, H] row
    b3 = params["b3"].reshape(1).astype(jnp.float32)      # [1] scalar -> SMEM

    x_specs = [pl.BlockSpec((TILE_B, d), lambda i: (i, 0)) for d in dims]
    w1_specs = [pl.BlockSpec((d, H), lambda i: (0, 0)) for d in dims]
    const2d = lambda shape: pl.BlockSpec(shape, lambda i: (0, 0))

    out = pl.pallas_call(
        _make_critic_kernel(n_parts),
        out_shape=jax.ShapeDtypeStruct((B_pad, 1), jnp.float32),
        grid=(num_tiles,),
        in_specs=x_specs + w1_specs + [
            const2d((1, H)),                                   # b1
            const2d((H, H)),                                   # w2
            const2d((1, H)),                                   # b2
            const2d((1, H)),                                   # w3 row
            pl.BlockSpec(memory_space=pltpu.MemorySpace.SMEM),  # b3 scalar
        ],
        out_specs=pl.BlockSpec((TILE_B, 1), lambda i: (i, 0)),
        compiler_params=pltpu.CompilerParams(
            dimension_semantics=("parallel",),
            vmem_limit_bytes=64 * 1024 * 1024,
        ),
    )(*parts, *w1_parts, b1, w2, b2, w3, b3)

    return out[:B]


def init_params(key, in_dim, hidden):
    """Deterministic init mimicking torch.nn.Linear default (U[-1/sqrt(in), 1/sqrt(in)])."""
    ks = jax.random.split(key, 6)

    def lin(kw, kb, fan_in, fan_out):
        bound = 1.0 / jnp.sqrt(jnp.float32(fan_in))
        W = jax.random.uniform(kw, (fan_out, fan_in), jnp.float32, -bound, bound)
        b = jax.random.uniform(kb, (fan_out,), jnp.float32, -bound, bound)
        return W, b

    W1, b1 = lin(ks[0], ks[1], in_dim, hidden)
    W2, b2 = lin(ks[2], ks[3], hidden, hidden)
    W3, b3 = lin(ks[4], ks[5], hidden, 1)
    return dict(W1=W1, b1=b1, W2=W2, b2=b2, W3=W3, b3=b3)


def reference_forward(state, actions, params):
    x = jnp.concatenate([state] + list(actions), axis=-1)
    h1 = jax.nn.relu(x @ params["W1"].T + params["b1"])
    h2 = jax.nn.relu(h1 @ params["W2"].T + params["b2"])
    return h2 @ params["W3"].T + params["b3"]


if __name__ == "__main__":
    key = jax.random.PRNGKey(0)
    k_state, k_a0, k_a1, k_params = jax.random.split(key, 4)

    batch = 8
    state_dim = 16
    action_dim = 4
    n_agents = 2
    hidden = 32
    in_dim = state_dim + n_agents * action_dim  # 24

    state = jax.random.normal(k_state, (batch, state_dim), jnp.float32)
    actions = [
        jax.random.normal(k_a0, (batch, action_dim), jnp.float32),
        jax.random.normal(k_a1, (batch, action_dim), jnp.float32),
    ]
    params = init_params(k_params, in_dim, hidden)

    q = multiagent_critic_forward(state, actions, params)
    q = jax.block_until_ready(q)

    q_ref = reference_forward(state, actions, params)
    assert q.shape == (batch, 1), q.shape
    assert jnp.allclose(q, q_ref, atol=1e-5, rtol=1e-5), (q, q_ref)

    # Also exercise a batch that needs tiling + a ragged last tile.
    big_B = 300
    kb1, kb2, kb3 = jax.random.split(jax.random.PRNGKey(1), 3)
    big_state = jax.random.normal(kb1, (big_B, state_dim), jnp.float32)
    big_actions = [
        jax.random.normal(kb2, (big_B, action_dim), jnp.float32),
        jax.random.normal(kb3, (big_B, action_dim), jnp.float32),
    ]
    q_big = jax.block_until_ready(
        multiagent_critic_forward(big_state, big_actions, params))
    q_big_ref = reference_forward(big_state, big_actions, params)
    assert q_big.shape == (big_B, 1), q_big.shape
    assert jnp.allclose(q_big, q_big_ref, atol=1e-5, rtol=1e-5)

    print("KERNEL_OK")
</pallas_src>

<mosaic_0001>
module attributes {stable_mosaic.version = 11 : i64} {
  func.func @kernel(%arg0: i32, %arg1: memref<8x16xf32, #tpu.memory_space<vmem>>, %arg2: memref<8x4xf32, #tpu.memory_space<vmem>>, %arg3: memref<8x4xf32, #tpu.memory_space<vmem>>, %arg4: memref<16x32xf32, #tpu.memory_space<vmem>>, %arg5: memref<4x32xf32, #tpu.memory_space<vmem>>, %arg6: memref<4x32xf32, #tpu.memory_space<vmem>>, %arg7: memref<1x32xf32, #tpu.memory_space<vmem>>, %arg8: memref<32x32xf32, #tpu.memory_space<vmem>>, %arg9: memref<1x32xf32, #tpu.memory_space<vmem>>, %arg10: memref<1x32xf32, #tpu.memory_space<vmem>>, %arg11: memref<1xf32, #tpu.memory_space<smem>>, %arg12: memref<8x1xf32, #tpu.memory_space<vmem>>) attributes {dimension_semantics = [#tpu.dimension_semantics<parallel>], iteration_bounds = array<i64: 1>, scalar_prefetch = 0 : i64, scratch_operands = 0 : i64, tpu.core_type = #tpu.core_type<tc>, window_params = [{transform_indices = @transform_0, window_bounds = array<i64: 8, 16>}, {transform_indices = @transform_1, window_bounds = array<i64: 8, 4>}, {transform_indices = @transform_2, window_bounds = array<i64: 8, 4>}, {pipeline_mode = #tpu.pipeline_mode<synchronous>, transform_indices = @transform_3, window_bounds = array<i64: 16, 32>}, {pipeline_mode = #tpu.pipeline_mode<synchronous>, transform_indices = @transform_4, window_bounds = array<i64: 4, 32>}, {pipeline_mode = #tpu.pipeline_mode<synchronous>, transform_indices = @transform_5, window_bounds = array<i64: 4, 32>}, {pipeline_mode = #tpu.pipeline_mode<synchronous>, transform_indices = @transform_6, window_bounds = array<i64: 1, 32>}, {pipeline_mode = #tpu.pipeline_mode<synchronous>, transform_indices = @transform_7, window_bounds = array<i64: 32, 32>}, {pipeline_mode = #tpu.pipeline_mode<synchronous>, transform_indices = @transform_8, window_bounds = array<i64: 1, 32>}, {pipeline_mode = #tpu.pipeline_mode<synchronous>, transform_indices = @transform_9, window_bounds = array<i64: 1, 32>}, {transform_indices = @transform_10, window_bounds = array<i64: 1>}, {transform_indices = @transform_11, window_bounds = array<i64: 8, 1>}]} {
    %c0 = arith.constant 0 : index
    %c0_0 = arith.constant 0 : index
    %0 = vector.load %arg1[%c0, %c0_0] : memref<8x16xf32, #tpu.memory_space<vmem>>, vector<8x16xf32>
    %c0_1 = arith.constant 0 : index
    %c0_2 = arith.constant 0 : index
    %1 = vector.load %arg4[%c0_1, %c0_2] : memref<16x32xf32, #tpu.memory_space<vmem>>, vector<16x32xf32>
    %cst = arith.constant dense<0.000000e+00> : vector<8x32xf32>
    %2 = tpu.matmul %0, %1, %cst {dimension_numbers = #tpu.dot_dimension_numbers<[1], [0], [0], [1], [0, 0, 1, 1], [], []>} : vector<8x16xf32>, vector<16x32xf32>, vector<8x32xf32> -> vector<8x32xf32>
    %c0_3 = arith.constant 0 : index
    %c0_4 = arith.constant 0 : index
    %3 = vector.load %arg2[%c0_3, %c0_4] : memref<8x4xf32, #tpu.memory_space<vmem>>, vector<8x4xf32>
    %c0_5 = arith.constant 0 : index
    %c0_6 = arith.constant 0 : index
    %4 = vector.load %arg5[%c0_5, %c0_6] : memref<4x32xf32, #tpu.memory_space<vmem>>, vector<4x32xf32>
    %cst_7 = arith.constant dense<0.000000e+00> : vector<8x32xf32>
    %5 = tpu.matmul %3, %4, %cst_7 {dimension_numbers = #tpu.dot_dimension_numbers<[1], [0], [0], [1], [0, 0, 1, 1], [], []>} : vector<8x4xf32>, vector<4x32xf32>, vector<8x32xf32> -> vector<8x32xf32>
    %6 = arith.addf %2, %5 : vector<8x32xf32>
    %c0_8 = arith.constant 0 : index
    %c0_9 = arith.constant 0 : index
    %7 = vector.load %arg3[%c0_8, %c0_9] : memref<8x4xf32, #tpu.memory_space<vmem>>, vector<8x4xf32>
    %c0_10 = arith.constant 0 : index
    %c0_11 = arith.constant 0 : index
    %8 = vector.load %arg6[%c0_10, %c0_11] : memref<4x32xf32, #tpu.memory_space<vmem>>, vector<4x32xf32>
    %cst_12 = arith.constant dense<0.000000e+00> : vector<8x32xf32>
    %9 = tpu.matmul %7, %8, %cst_12 {dimension_numbers = #tpu.dot_dimension_numbers<[1], [0], [0], [1], [0, 0, 1, 1], [], []>} : vector<8x4xf32>, vector<4x32xf32>, vector<8x32xf32> -> vector<8x32xf32>
    %10 = arith.addf %6, %9 : vector<8x32xf32>
    %c0_13 = arith.constant 0 : index
    %c0_14 = arith.constant 0 : index
    %11 = vector.load %arg7[%c0_13, %c0_14] : memref<1x32xf32, #tpu.memory_space<vmem>>, vector<1x32xf32>
    %12 = vector.broadcast %11 : vector<1x32xf32> to vector<8x32xf32>
    %13 = arith.addf %10, %12 : vector<8x32xf32>
    %cst_15 = arith.constant 0.000000e+00 : f32
    %14 = vector.broadcast %cst_15 : f32 to vector<8x32xf32>
    %15 = arith.maximumf %13, %14 : vector<8x32xf32>
    %c0_16 = arith.constant 0 : index
    %c0_17 = arith.constant 0 : index
    %16 = vector.load %arg8[%c0_16, %c0_17] : memref<32x32xf32, #tpu.memory_space<vmem>>, vector<32x32xf32>
    %cst_18 = arith.constant dense<0.000000e+00> : vector<8x32xf32>
    %17 = tpu.matmul %15, %16, %cst_18 {dimension_numbers = #tpu.dot_dimension_numbers<[1], [0], [0], [1], [0, 0, 1, 1], [], []>} : vector<8x32xf32>, vector<32x32xf32>, vector<8x32xf32> -> vector<8x32xf32>
    %c0_19 = arith.constant 0 : index
    %c0_20 = arith.constant 0 : index
    %18 = vector.load %arg9[%c0_19, %c0_20] : memref<1x32xf32, #tpu.memory_space<vmem>>, vector<1x32xf32>
    %19 = vector.broadcast %18 : vector<1x32xf32> to vector<8x32xf32>
    %20 = arith.addf %17, %19 : vector<8x32xf32>
    %cst_21 = arith.constant 0.000000e+00 : f32
    %21 = vector.broadcast %cst_21 : f32 to vector<8x32xf32>
    %22 = arith.maximumf %20, %21 : vector<8x32xf32>
    %c0_22 = arith.constant 0 : index
    %c0_23 = arith.constant 0 : index
    %23 = vector.load %arg10[%c0_22, %c0_23] : memref<1x32xf32, #tpu.memory_space<vmem>>, vector<1x32xf32>
    %24 = vector.broadcast %23 : vector<1x32xf32> to vector<8x32xf32>
    %25 = arith.mulf %22, %24 : vector<8x32xf32>
    %cst_24 = arith.constant dense<0.000000e+00> : vector<8xf32>
    %26 = vector.multi_reduction <add>, %25, %cst_24 [1] : vector<8x32xf32> to vector<8xf32>
    %27 = vector.shape_cast %26 : vector<8xf32> to vector<8x1xf32>
    %c0_25 = arith.constant 0 : index
    %28 = memref.load %arg11[%c0_25] : memref<1xf32, #tpu.memory_space<smem>>
    %29 = vector.broadcast %28 : f32 to vector<8x1xf32>
    %30 = arith.addf %27, %29 : vector<8x1xf32>
    %c0_26 = arith.constant 0 : index
    %c0_27 = arith.constant 0 : index
    %31 = vector.load %arg12[%c0_26, %c0_27] : memref<8x1xf32, #tpu.memory_space<vmem>>, vector<8x1xf32>
    tpu.vector_store %arg12[%c0_26, %c0_27], %30 {strides = array<i32>} : memref<8x1xf32, #tpu.memory_space<vmem>>, vector<8x1xf32>,
    return
  }
  func.func @transform_0(%arg0: i32) -> (i32, i32) {
    %c0_i32 = arith.constant 0 : i32
    %c0_i32_0 = arith.constant 0 : i32
    return %arg0, %c0_i32 : i32, i32
  }
  func.func @transform_1(%arg0: i32) -> (i32, i32) {
    %c0_i32 = arith.constant 0 : i32
    %c0_i32_0 = arith.constant 0 : i32
    return %arg0, %c0_i32 : i32, i32
  }
  func.func @transform_2(%arg0: i32) -> (i32, i32) {
    %c0_i32 = arith.constant 0 : i32
    %c0_i32_0 = arith.constant 0 : i32
    return %arg0, %c0_i32 : i32, i32
  }
  func.func @transform_3(%arg0: i32) -> (i32, i32) {
    %c0_i32 = arith.constant 0 : i32
    %c0_i32_0 = arith.constant 0 : i32
    %c0_i32_1 = arith.constant 0 : i32
    return %c0_i32, %c0_i32_0 : i32, i32
  }
  func.func @transform_4(%arg0: i32) -> (i32, i32) {
    %c0_i32 = arith.constant 0 : i32
    %c0_i32_0 = arith.constant 0 : i32
    %c0_i32_1 = arith.constant 0 : i32
    return %c0_i32, %c0_i32_0 : i32, i32
  }
  func.func @transform_5(%arg0: i32) -> (i32, i32) {
    %c0_i32 = arith.constant 0 : i32
    %c0_i32_0 = arith.constant 0 : i32
    %c0_i32_1 = arith.constant 0 : i32
    return %c0_i32, %c0_i32_0 : i32, i32
  }
  func.func @transform_6(%arg0: i32) -> (i32, i32) {
    %c0_i32 = arith.constant 0 : i32
    %c0_i32_0 = arith.constant 0 : i32
    %c0_i32_1 = arith.constant 0 : i32
    return %c0_i32, %c0_i32_0 : i32, i32
  }
  func.func @transform_7(%arg0: i32) -> (i32, i32) {
    %c0_i32 = arith.constant 0 : i32
    %c0_i32_0 = arith.constant 0 : i32
    %c0_i32_1 = arith.constant 0 : i32
    return %c0_i32, %c0_i32_0 : i32, i32
  }
  func.func @transform_8(%arg0: i32) -> (i32, i32) {
    %c0_i32 = arith.constant 0 : i32
    %c0_i32_0 = arith.constant 0 : i32
    %c0_i32_1 = arith.constant 0 : i32
    return %c0_i32, %c0_i32_0 : i32, i32
  }
  func.func @transform_9(%arg0: i32) -> (i32, i32) {
    %c0_i32 = arith.constant 0 : i32
    %c0_i32_0 = arith.constant 0 : i32
    %c0_i32_1 = arith.constant 0 : i32
    return %c0_i32, %c0_i32_0 : i32, i32
  }
  func.func @transform_10(%arg0: i32) -> i32 {
    %c0_i32 = arith.constant 0 : i32
    %c0_i32_0 = arith.constant 0 : i32
    return %c0_i32 : i32
  }
  func.func @transform_11(%arg0: i32) -> (i32, i32) {
    %c0_i32 = arith.constant 0 : i32
    %c0_i32_0 = arith.constant 0 : i32
    return %arg0, %c0_i32 : i32, i32
  }
}

</mosaic_0001>

<bundles_post_ra>
// kernel: multiagent_critic_forward.1
= control target key start
LH: loop header
LB: loop body
LE: loop exit
PB: predicated region body
PF: predicated region fallthrough
CT: control target
= control target key end

     0   :  { %17 = vsyncpa [#allocation4], 0  ;;  %s1096_s0 = inlined_call_operand.hbm [shape: f32[8,16], index: 0, kind: input, shape index: {}]   ;;  %s1097_s1 = inlined_call_operand.hbm [shape: f32[8,4], index: 1, kind: input, shape index: {}]   ;;  %s1098_s2 = inlined_call_operand.hbm [shape: f32[8,4], index: 2, kind: input, shape index: {}]   ;;  %s1099_s3 = inlined_call_operand.hbm [shape: f32[16,32], index: 3, kind: input, shape index: {}]   ;;  %s1100_s4 = inlined_call_operand.hbm [shape: f32[4,32], index: 4, kind: input, shape index: {}]   ;;  %s1101_s5 = inlined_call_operand.hbm [shape: f32[4,32], index: 5, kind: input, shape index: {}]   ;;  %s1102_s6 = inlined_call_operand.hbm [shape: f32[1,32], index: 6, kind: input, shape index: {}]   ;;  %s1103_s7 = inlined_call_operand.hbm [shape: f32[32,32], index: 7, kind: input, shape index: {}]   ;;  %s1104_s8 = inlined_call_operand.hbm [shape: f32[1,32], index: 8, kind: input, shape index: {}]   ;;  %s1105_s9 = inlined_call_operand.hbm [shape: f32[1,32], index: 9, kind: input, shape index: {}]   ;;  %s1106_s10 = inlined_call_operand.<no memory space> [shape: f32[1], index: 10, kind: input, shape index: {}]   ;;  %s1107_s11 = inlined_call_operand.hbm [shape: f32[8,1], index: 11, kind: output, shape index: {}]  }
   0x1   :  { %18 = vsyncpa [#allocation7], 0 }
   0x2   :  { %19 = vsyncpa [#allocation10], 0 }
   0x3   :  { %20 = vsyncpa [#allocation13], 0 }
   0x4   :  { %21 = vsyncpa [#allocation16], 0 }
   0x5   :  { %22 = vsyncpa [#allocation19], 0 }
   0x6   :  { %23 = vsyncpa [#allocation5], 0  ;;  %s857_s17 = smov [#allocation6]   ;;  %s858_s19 = smov [#allocation9]  }
   0x7   :  { %s40_s18 = sshll.u32 %s857_s17, 4  ;;  %s59_s20 = sshll.u32 %s858_s19, 4  ;;  %s41_s18 = int_to_ptr.vmem [resolvable:$true] %s40_s18  ;;  %s933_s20 = int_to_ptr.vmem [resolvable:$true] %s59_s20 }
   0x8   :  { %s601_s23 = scalar_lea.hbm %s1097_s1, 128 }
   0x9   :  { %p602_p0 = scmp.ne.s32.totalorder %s1097_s1, %s601_s23  ;;  %p605_p1 = scmp.lt.u32.totalorder %s601_s23, %s1097_s1 }
   0xb   :  { %p607_p2 = pnand %p605_p1, %p602_p0 }
   0xd   :  { %610 = shalt.err (!%p607_p2)
}
   0xe   :  { %s611_s28 = scalar_lea.vmem %s41_s18, 128  ;;  %p616_p4 = scmp.lt.s32.totalorder %s41_s18, %s41_s18 }
   0xf   :  { %p612_p3 = scmp.ne.s32.totalorder %s41_s18, %s611_s28  ;;  %p617_p5 = scmp.lt.s32.totalorder %s611_s28, %s611_s28 }
  0x11   :  { %p618_p6 = por %p617_p5, %p616_p4 }
  0x13   :  { %p619_p7 = pnand %p618_p6, %p612_p3 }
  0x15   :  { %622 = shalt.err (!%p619_p7)
}
  0x16   :  { %43 = dma.hbm_to_vmem [thread:$0]  %s1097_s1, 128, %s41_s18, [#allocation7]  }
  0x17   :  { %s623_s14 = scalar_lea.hbm %s1099_s3, 256 }
  0x18   :  { %p624_p8 = scmp.ne.s32.totalorder %s1099_s3, %s623_s14  ;;  %p627_p9 = scmp.lt.u32.totalorder %s623_s14, %s1099_s3 }
  0x1a   :  { %p629_p10 = pnand %p627_p9, %p624_p8 }
  0x1c   :  { %632 = shalt.err (!%p629_p10)
}
  0x1d   :  { %s633_s21 = scalar_lea.vmem %s933_s20, 256  ;;  %p638_p12 = scmp.lt.s32.totalorder %s933_s20, %s933_s20 }
  0x1e   :  { %p634_p11 = scmp.ne.s32.totalorder %s933_s20, %s633_s21  ;;  %p639_p13 = scmp.lt.s32.totalorder %s633_s21, %s633_s21 }
  0x20   :  { %p640_p0 = por %p639_p13, %p638_p12 }
  0x22   :  { %p641_p1 = pnand %p640_p0, %p634_p11 }
  0x24   :  { %644 = shalt.err (!%p641_p1)
}
  0x25   :  { %s859_s1 = smov 128   ;;  %s860_s18 = smov 8  }
  0x26   :  { %65 = dma.hbm_to_vmem [thread:$0]  %s1099_s3, 256, %s933_s20, [#allocation10], %s859_s1, %s859_s1, %s860_s18  }
  0x27   :  { %s861_s24 = smov [#allocation12]   ;;  %s862_s26 = smov [#allocation15]  }
  0x28   :  { %s82_s25 = sshll.u32 %s861_s24, 4  ;;  %s101_s27 = sshll.u32 %s862_s26, 4  ;;  %s83_s25 = int_to_ptr.vmem [resolvable:$true] %s82_s25  ;;  %s967_s27 = int_to_ptr.vmem [resolvable:$true] %s101_s27 }
  0x29   :  { %s645_s30 = scalar_lea.hbm %s1101_s5, 64 }
  0x2a   :  { %p646_p2 = scmp.ne.s32.totalorder %s1101_s5, %s645_s30  ;;  %p649_p3 = scmp.lt.u32.totalorder %s645_s30, %s1101_s5 }
  0x2c   :  { %p651_p4 = pnand %p649_p3, %p646_p2 }
  0x2e   :  { %654 = shalt.err (!%p651_p4)
}
  0x2f   :  { %s655_s3 = scalar_lea.vmem %s83_s25, 64  ;;  %p660_p6 = scmp.lt.s32.totalorder %s83_s25, %s83_s25 }
  0x30   :  { %p656_p5 = scmp.ne.s32.totalorder %s83_s25, %s655_s3  ;;  %p661_p7 = scmp.lt.s32.totalorder %s655_s3, %s655_s3 }
  0x32   :  { %p662_p8 = por %p661_p7, %p660_p6 }
  0x34   :  { %p663_p9 = pnand %p662_p8, %p656_p5 }
  0x36   :  { %666 = shalt.err (!%p663_p9)
}
  0x37   :  { %85 = dma.hbm_to_vmem [thread:$0]  %s1101_s5, 64, %s83_s25, [#allocation13]  }
  0x38   :  { %s667_s21 = scalar_lea.hbm %s1103_s7, 512 }
  0x39   :  { %p668_p10 = scmp.ne.s32.totalorder %s1103_s7, %s667_s21  ;;  %p671_p11 = scmp.lt.u32.totalorder %s667_s21, %s1103_s7 }
  0x3b   :  { %p673_p12 = pnand %p671_p11, %p668_p10 }
  0x3d   :  { %676 = shalt.err (!%p673_p12)
}
  0x3e   :  { %s677_s28 = scalar_lea.vmem %s967_s27, 512  ;;  %p682_p0 = scmp.lt.s32.totalorder %s967_s27, %s967_s27 }
  0x3f   :  { %p678_p13 = scmp.ne.s32.totalorder %s967_s27, %s677_s28  ;;  %p683_p1 = scmp.lt.s32.totalorder %s677_s28, %s677_s28 }
  0x41   :  { %p684_p2 = por %p683_p1, %p682_p0 }
  0x43   :  { %p685_p3 = pnand %p684_p2, %p678_p13 }
  0x45   :  { %688 = shalt.err (!%p685_p3)
}
  0x46   :  { %107 = dma.hbm_to_vmem [thread:$0]  %s1103_s7, 512, %s967_s27, [#allocation16], %s859_s1, %s859_s1, %s860_s18  }
  0x47   :  { %s863_s29 = smov [#allocation3]   ;;  %s864_s12 = smov [#allocation8]  }
  0x48   :  { %s30_s30 = sshll.u32 %s863_s29, 4  ;;  %s50_s13 = sshll.u32 %s864_s12, 4  ;;  %s31_s30 = int_to_ptr.vmem [resolvable:$true] %s30_s30  ;;  %s51_s13 = int_to_ptr.vmem [resolvable:$true] %s50_s13 }
  0x49   :  { %s689_s3 = scalar_lea.hbm %s1096_s0, 128 }
  0x4a   :  { %p690_p4 = scmp.ne.s32.totalorder %s1096_s0, %s689_s3  ;;  %p693_p5 = scmp.lt.u32.totalorder %s689_s3, %s1096_s0 }
  0x4c   :  { %p695_p6 = pnand %p693_p5, %p690_p4 }
  0x4e   :  { %698 = shalt.err (!%p695_p6)
}
  0x4f   :  { %s699_s7 = scalar_lea.vmem %s31_s30, 128  ;;  %p704_p8 = scmp.lt.s32.totalorder %s31_s30, %s31_s30 }
  0x50   :  { %p700_p7 = scmp.ne.s32.totalorder %s31_s30, %s699_s7  ;;  %p705_p9 = scmp.lt.s32.totalorder %s699_s7, %s699_s7 }
  0x52   :  { %p706_p10 = por %p705_p9, %p704_p8 }
  0x54   :  { %p707_p11 = pnand %p706_p10, %p700_p7 }
  0x56   :  { %710 = shalt.err (!%p707_p11)
}
  0x57   :  { %33 = dma.hbm_to_vmem [thread:$0]  %s1096_s0, 128, %s31_s30, [#allocation4]  }
  0x58   :  { %s711_s22 = scalar_lea.hbm %s1098_s2, 128 }
  0x59   :  { %p712_p12 = scmp.ne.s32.totalorder %s1098_s2, %s711_s22  ;;  %p715_p13 = scmp.lt.u32.totalorder %s711_s22, %s1098_s2 }
  0x5b   :  { %p717_p0 = pnand %p715_p13, %p712_p12 }
  0x5d   :  { %720 = shalt.err (!%p717_p0)
}
  0x5e   :  { %s721_s5 = scalar_lea.vmem %s51_s13, 128  ;;  %p726_p2 = scmp.lt.s32.totalorder %s51_s13, %s51_s13 }
  0x5f   :  { %p722_p1 = scmp.ne.s32.totalorder %s51_s13, %s721_s5  ;;  %p727_p3 = scmp.lt.s32.totalorder %s721_s5, %s721_s5 }
  0x61   :  { %p728_p4 = por %p727_p3, %p726_p2 }
  0x63   :  { %p729_p5 = pnand %p728_p4, %p722_p1 }
  0x65   :  { %732 = shalt.err (!%p729_p5)
}
  0x66   :  { %53 = dma.hbm_to_vmem [thread:$0]  %s1098_s2, 128, %s51_s13, [#allocation7]  }
  0x67   :  { %s865_s29 = smov [#allocation11]   ;;  %s866_s12 = smov [#allocation14]  }
  0x68   :  { %s72_s30 = sshll.u32 %s865_s29, 4  ;;  %s92_s14 = sshll.u32 %s866_s12, 4  ;;  %s73_s30 = int_to_ptr.vmem [resolvable:$true] %s72_s30  ;;  %s93_s14 = int_to_ptr.vmem [resolvable:$true] %s92_s14 }
  0x69   :  { %s733_s20 = scalar_lea.hbm %s1100_s4, 64 }
  0x6a   :  { %p734_p6 = scmp.ne.s32.totalorder %s1100_s4, %s733_s20  ;;  %p737_p7 = scmp.lt.u32.totalorder %s733_s20, %s1100_s4 }
  0x6c   :  { %p739_p8 = pnand %p737_p7, %p734_p6 }
  0x6e   :  { %742 = shalt.err (!%p739_p8)
}
  0x6f   :  { %s743_s2 = scalar_lea.vmem %s73_s30, 64  ;;  %p748_p10 = scmp.lt.s32.totalorder %s73_s30, %s73_s30 }
  0x70   :  { %p744_p9 = scmp.ne.s32.totalorder %s73_s30, %s743_s2  ;;  %p749_p11 = scmp.lt.s32.totalorder %s743_s2, %s743_s2 }
  0x72   :  { %p750_p12 = por %p749_p11, %p748_p10 }
  0x74   :  { %p751_p13 = pnand %p750_p12, %p744_p9 }
  0x76   :  { %754 = shalt.err (!%p751_p13)
}
  0x77   :  { %75 = dma.hbm_to_vmem [thread:$0]  %s1100_s4, 64, %s73_s30, [#allocation10]  }
  0x78   :  { %s755_s21 = scalar_lea.hbm %s1102_s6, 16 }
  0x79   :  { %p756_p0 = scmp.ne.s32.totalorder %s1102_s6, %s755_s21  ;;  %p759_p1 = scmp.lt.u32.totalorder %s755_s21, %s1102_s6 }
  0x7b   :  { %p761_p2 = pnand %p759_p1, %p756_p0 }
  0x7d   :  { %764 = shalt.err (!%p761_p2)
}
  0x7e   :  { %s765_s28 = scalar_lea.vmem %s93_s14, 16  ;;  %s769_s5 = scalar_lea.vmem %s93_s14, 32 }
  0x7f   :  { %p766_p3 = scmp.ne.s32.totalorder %s93_s14, %s765_s28  ;;  %p770_p4 = scmp.lt.s32.totalorder %s93_s14, %s93_s14 }
  0x80   :  { %p771_p5 = scmp.lt.s32.totalorder %s769_s5, %s765_s28 }
  0x82   :  { %p772_p6 = por %p771_p5, %p770_p4 }
  0x84   :  { %p773_p7 = pnand %p772_p6, %p766_p3 }
  0x86   :  { %776 = shalt.err (!%p773_p7)
}
  0x87   :  { %95 = dma.hbm_to_vmem [thread:$0]  %s1102_s6, 16, %s93_s14, [#allocation13]  }
  0x88   :  { %s867_s25 = smov [#allocation17]   ;;  %s868_s30 = smov [#allocation18]  }
  0x89   :  { %s114_s29 = sshll.u32 %s867_s25, 4  ;;  %s124_s12 = sshll.u32 %s868_s30, 4  ;;  %s115_s29 = int_to_ptr.vmem [resolvable:$true] %s114_s29  ;;  %s125_s12 = int_to_ptr.vmem [resolvable:$true] %s124_s12 }
  0x8a   :  { %s777_s20 = scalar_lea.hbm %s1104_s8, 16 }
  0x8b   :  { %p778_p8 = scmp.ne.s32.totalorder %s1104_s8, %s777_s20  ;;  %p781_p9 = scmp.lt.u32.totalorder %s777_s20, %s1104_s8 }
  0x8d   :  { %p783_p10 = pnand %p781_p9, %p778_p8 }
  0x8f   :  { %786 = shalt.err (!%p783_p10)
}
  0x90   :  { %s787_s6 = scalar_lea.vmem %s115_s29, 16  ;;  %s791_s14 = scalar_lea.vmem %s115_s29, 32 }
  0x91   :  { %p788_p11 = scmp.ne.s32.totalorder %s115_s29, %s787_s6  ;;  %p792_p12 = scmp.lt.s32.totalorder %s115_s29, %s115_s29 }
  0x92   :  { %p793_p13 = scmp.lt.s32.totalorder %s791_s14, %s787_s6 }
  0x94   :  { %p794_p0 = por %p793_p13, %p792_p12 }
  0x96   :  { %p795_p1 = pnand %p794_p0, %p788_p11 }
  0x98   :  { %798 = shalt.err (!%p795_p1)
}
  0x99   :  { %117 = dma.hbm_to_vmem [thread:$0]  %s1104_s8, 16, %s115_s29, [#allocation16]  }
  0x9a   :  { %s799_s27 = scalar_lea.hbm %s1105_s9, 16 }
  0x9b   :  { %p800_p2 = scmp.ne.s32.totalorder %s1105_s9, %s799_s27  ;;  %p803_p3 = scmp.lt.u32.totalorder %s799_s27, %s1105_s9 }
  0x9d   :  { %p805_p4 = pnand %p803_p3, %p800_p2 }
  0x9f   :  { %808 = shalt.err (!%p805_p4)
}
  0xa0   :  { %s809_s26 = scalar_lea.vmem %s125_s12, 16  ;;  %s813_s28 = scalar_lea.vmem %s125_s12, 32 }
  0xa1   :  { %p810_p5 = scmp.ne.s32.totalorder %s125_s12, %s809_s26  ;;  %p814_p6 = scmp.lt.s32.totalorder %s125_s12, %s125_s12 }
  0xa2   :  { %p815_p7 = scmp.lt.s32.totalorder %s813_s28, %s809_s26 }
  0xa4   :  { %p816_p8 = por %p815_p7, %p814_p6 }
  0xa6   :  { %p817_p9 = pnand %p816_p8, %p810_p5 }
  0xa8   :  { %820 = shalt.err (!%p817_p9)
}
  0xa9   :  { %127 = dma.hbm_to_vmem [thread:$0]  %s1105_s9, 16, %s125_s12, [#allocation19]  }
  0xaa   :  { %843 = dma.done.wait [#allocation4], 128  }
  0xab   :  { %844 = vsyncadd [#allocation4], 4294967168 }
  0xac   :  { %845 = dma.done.wait [#allocation7], 256  }
  0xad   :  { %846 = vsyncadd [#allocation7], 4294967040 }
  0xae   :  { %847 = dma.done.wait [#allocation10], 320  }
  0xaf   :  { %848 = vsyncadd [#allocation10], 4294966976 }
  0xb0   :  { %849 = dma.done.wait [#allocation13], 80  }
  0xb1   :  { %850 = vsyncadd [#allocation13], 4294967216 }
  0xb2   :  { %851 = dma.done.wait [#allocation16], 528  }
  0xb3   :  { %852 = vsyncadd [#allocation16], 4294966768 }
  0xb4   :  { %853 = dma.done.wait [#allocation19], 16  }
  0xb5   :  { %854 = vsyncadd [#allocation19], 4294967280  ;;  %v869_v0 = vmov 0.0   ;;  %vm870_vm0 = vmmov 0   ;;  %v871_v1 = vmov 0.0|0.0   ;;  %vm169_vm1 = vcmask 1043456  }
  0xb6   :  { %548 = vmatprep.subr.mxu0 %v869_v0  ;;  %550 = vmatprep.mubr.msk.f32.mxu0 %vm870_vm0, %v869_v0  ;;  %vm165_vm2 = vcmask 31744   ;;  %v164_v2 = vld [vmem:[#allocation11] sm:$0xf]  ;;  %v161_v4 = vld [vmem:[#allocation9] sm:$0xff]  ;;  %v162_v5 = vld [vmem:[#allocation9 + $0x8] sm:$0xff]  ;;  %vm243_vm3 = vcmask 130048   ;;  %v503_v35 = vstv %s1106_s10 }
  0xb7   :  { %579 = vmatprep.subr.bf16.mxu1 %v871_v1  ;;  %573 = vmatprep.mubr.msk.f32.mxu1 %vm870_vm0, %v869_v0  ;;  %v163_v3 = vld [vmem:[#allocation6] sm:$0xff]  ;;  %v577_v6 = vpack.c.bf16 %v162_v5, %v161_v4  ;;  %v160_v7 = vld [vmem:[#allocation3] sm:$0xff]  ;;  %v317_v9 = vld [vmem:[#allocation8] sm:$0xff]  ;;  %vm416_vm4 = vcmask 261120   ;;  %s872_s0 = smov [#allocation20]   ;;  %vm505_vm5 = vcmask 7168  }
  0xb8   :  { %549 = vmatpush3.msk.msra.mxu0 %vm169_vm1, %v164_v2  ;;  %v318_v8 = vld [vmem:[#allocation12] sm:$0xf]  ;;  %v405_v10 = vld [vmem:[#allocation15] sm:$0xff]  ;;  %v406_v11 = vld [vmem:[#allocation15 + $0x8] sm:$0xff]  ;;  %s513_s25 = sshll.u32 %s872_s0, 4  ;;  %s514_s25 = int_to_ptr.vmem [resolvable:$true] %s513_s25 }
  0xb9   :  { %551 = vmatmul.mubr.msk.f32.vlgmr.msra.gmra.mrb[0].mxu0 %vm165_vm2, %v163_v3  ;;  %576 = vmatprep.subr.bf16.mxu0 %v871_v1  ;;  %v580_v12 = vpack.c.bf16 %v406_v11, %v405_v10  ;;  %v407_v13 = vld [vmem:[#allocation15 + $0x10] sm:$0xff]  ;;  %v408_v14 = vld [vmem:[#allocation15 + $0x18] sm:$0xff]  ;;  %v533_v27 = vld [vmem:[#allocation17] ss:$0 sm:$0xff]  ;;  %s821_s29 = scalar_lea.vmem %s514_s25, 128  ;;  %p826_p11 = scmp.lt.s32.totalorder %s514_s25, %s514_s25 }
  0xba   :  { %557 = vmatprep.mubr.msk.f32.mxu0 %vm870_vm0, %v869_v0  ;;  %578 = vmatpush3.bf16.msra.mxu0 %v577_v6  ;;  %v583_v15 = vpack.c.bf16 %v408_v14, %v407_v13  ;;  %v532_v22 = vld [vmem:[#allocation14] ss:$0 sm:$0xff]  ;;  %v535_v31 = vld [vmem:[#allocation18] ss:$0 sm:$0xff]  ;;  %p822_p10 = scmp.ne.s32.totalorder %s514_s25, %s821_s29  ;;  %p827_p12 = scmp.lt.s32.totalorder %s821_s29, %s821_s29 }
  0xbb   :  { %560 = vmatprep.subr.mxu0 %v869_v0  ;;  %581 = vmatpush3.bf16.msra.mxu1 %v580_v12 }
  0xbc   :  { %582 = vmatprep.subr.bf16.mxu1 %v871_v1  ;;  %p828_p13 = por %p827_p12, %p826_p11 }
  0xbd   :  { %558 = vmatmul.mubr.msk.f32.vlgmr.msra.gmra.mrb[2].mxu0 %vm243_vm3, %v160_v7 }
  0xbe   :  { %561 = vmatpush3.msk.msra.mxu0 %vm169_vm1, %v318_v8  ;;  %562 = vmatprep.mubr.msk.f32.mxu0 %vm870_vm0, %v869_v0  ;;  %p829_p0 = pnand %p828_p13, %p822_p10 }
  0xbf   :  { %584 = vmatpush3.bf16.msra.mxu1 %v583_v15 }
  0xc1   :  { %563 = vmatmul.mubr.msk.f32.vlgmr.msra.gmra.mrb[4].mxu0 %vm165_vm2, %v317_v9 }
 0x18c   :  { %v239_v16 = vpop.f32.mrb[0].mxu0 }
 0x18d   :  { %v552_v17 = vpop.f32.mrb[1].mxu0 }
 0x190   :  { %v313_v18 = vpop.f32.mrb[2].mxu0 }
 0x191   :  { %v314_v19 = vadd.f32 %v313_v18, %v239_v16  ;;  %v559_v20 = vpop.f32.mrb[3].mxu0 }
 0x194   :  { %v391_v21 = vpop.f32.mrb[4].mxu0 }
 0x195   :  { %v395_v23 = vadd.f32 %v391_v21, %v314_v19  ;;  %v564_v24 = vpop.f32.mrb[5].mxu0 }
 0x197   :  { %v403_v25 = vadd.f32 %v532_v22, %v395_v23 }
 0x199   :  { %v404_v26 = vmax.f32 %v403_v25, 0.0 }
 0x19b   :  { %574 = vmatmul.mubr.msk.f32.vlgmr.msra.gmra.mrb[0].mxu1 %vm416_vm4, %v404_v26 }
 0x26e   :  { %v486_v28 = vpop.f32.mrb[0].mxu1 }
 0x26f   :  { %v487_v29 = vadd.f32 %v533_v27, %v486_v28  ;;  %v575_v30 = vpop.f32.mrb[1].mxu1 }
 0x271   :  { %v490_v32 = vmax.f32 %v487_v29, 0.0 }
 0x273   :  { %v498_v33 = vmul.f32 %v535_v31, %v490_v32 }
 0x275   :  { %v499_v34 = vsel %vm416_vm4, %v498_v33, 0.0 }
 0x276   :  { %500 = vadd.xlane.f32.xlu0 %v499_v34 }
 0x303   :  { %v501_v36 = vpop.xlane.xlu0 %500 }
 0x304   :  { %v504_v37 = vadd.f32 %v503_v35, %v501_v36 }
 0x306   :  { %506 = vst.msk [vmem:[#allocation20] sm:$0xff] %vm505_vm5, %v504_v37 }
 0x307   :  { %832 = shalt.err (!%p829_p0)
}
 0x308   :  { %s833_s15 = scalar_lea.hbm %s1107_s11, 128 }
 0x309   :  { %p834_p1 = scmp.ne.s32.totalorder %s1107_s11, %s833_s15  ;;  %p837_p2 = scmp.lt.u32.totalorder %s833_s15, %s1107_s11 }
 0x30b   :  { %p839_p3 = pnand %p837_p2, %p834_p1 }
 0x30d   :  { %842 = shalt.err (!%p839_p3)
}
 0x30e   :  { %516 = dma.vmem_to_hbm [thread:$0]  %s514_s25, 128, %s1107_s11, [#allocation5]  }
 0x30f   :  { %855 = dma.done.wait [#allocation5], 128  }
 0x310   :  { %856 = vsyncadd [#allocation5], 4294967168 }
 0x311   :  { %520 = vsyncpa [#allocation4], 1 }
 0x312   :  { %521 = vsyncpa [#allocation7], 1 }
 0x313   :  { %522 = vsyncpa [#allocation10], 1 }
 0x314   :  { %523 = vsyncpa [#allocation13], 1 }
 0x315   :  { %524 = vsyncpa [#allocation16], 1 }
 0x316   :  { %525 = vsyncpa [#allocation19], 1 }
 0x317   :  { %526 = vsyncpa [#allocation5], 1 }

</bundles_post_ra>
